<compile_context>
chip_gen: v5e
topology: v5e:2x2
jax: 0.10.0
libtpu: 0.0.40
codegen_flags: <defaults>
</compile_context>

<pallas_src>
import functools

import jax
import jax.numpy as jnp
from jax import lax
from jax.experimental import pallas as pl
from jax.experimental.pallas import tpu as pltpu


def _fused_iter_seq2d_kernel(x0_ref, w_ref, b_first_ref, b_full_ref, o_ref, *,
                             block_size, num_blocks, num_iterations,
                             return_last):
    """All iterations fused; weights resident, activations in vregs.

    x0_ref:      (TB, D)   f32   initial input tile (block-column 0 only)
    w_ref:       (n*D,n*D) bf16  flattened block weights, rows = input blocks
    b_first_ref: (1, n*D)  f32   bias for iteration 0 (column-0 biases only)
    b_full_ref:  (1, n*D)  f32   bias for iterations >= 1 (sum over columns)
    o_ref:       (TB, D)   f32   last-block output  (or (TB, n*D) if all blocks)
    """
    D = block_size
    n = num_blocks

    # Hoist bias loads/broadcasts out of the (unrolled) loop body.
    b_first = b_first_ref[...]
    b_full = b_full_ref[...]

    # ---- iteration 0: X = [x0, None, ..., None] -----------------------------
    # Only block-column 0 contributes -> (TB, D) @ (D, n*D) against the first D
    # rows of the flattened weights, plus column-0 biases only.
    x0 = x0_ref[...].astype(jnp.bfloat16)
    y0 = jnp.dot(x0, w_ref[:D, :], preferred_element_type=jnp.float32)
    act = jnp.maximum(y0 + b_first, 0.0)                      # (TB, n*D) f32

    # ---- iterations 1 .. num_iterations-1 -----------------------------------
    # Activation carried in the loop carry (vreg-resident, no VMEM round-trip);
    # one wide lane-dense bf16 MXU pass + f32 bias/ReLU per iteration.
    def body(_, a):
        y = jnp.dot(a.astype(jnp.bfloat16), w_ref[...],
                    preferred_element_type=jnp.float32)
        return jnp.maximum(y + b_full, 0.0)

    if num_iterations > 1:
        act = lax.fori_loop(0, num_iterations - 1, body, act,
                            unroll=min(num_iterations - 1, 4))

    if return_last:
        o_ref[...] = act[:, (n - 1) * D:]
    else:
        o_ref[...] = act


def prepare_params(W, b, weight_dtype=jnp.bfloat16):
    """One-time re-layout of the block-of-Linears parameters (cache the result).

    W: (n, n, D, D) with W[i, j] = torch Linear(i,j).weight.T
    b: (n, n, D)    with b[i, j] = torch Linear(i,j).bias

    Flattened layout:  y_flat[:, i*D:(i+1)*D] = sum_j x_flat[:, j*D:(j+1)*D] @ W[i, j]
      => w_flat[j*D + din, i*D + dout] = W[i, j, din, dout]
    """
    n = W.shape[0]
    D = W.shape[2]
    w_flat = jnp.transpose(W, (1, 2, 0, 3)).reshape(n * D, n * D).astype(weight_dtype)
    b_first = b[:, 0, :].reshape(1, n * D).astype(jnp.float32)        # iter 0
    b_full = jnp.sum(b, axis=1).reshape(1, n * D).astype(jnp.float32)  # iters >= 1
    return w_flat, b_first, b_full


@functools.partial(jax.jit,
                   static_argnames=("num_iterations", "return_last", "batch_tile"))
def iterative_sequential2d(x0, w_flat, b_first, b_full, *, num_iterations=3,
                           return_last=True, batch_tile=256):
    """Pallas implementation of IterativeSequential2D.forward for a single
    tensor input x0 of shape (batch, D), using parameters from prepare_params().
    """
    nD = w_flat.shape[0]
    B, D = x0.shape
    n = nD // D
    x0 = x0.astype(jnp.float32)

    # Batch tile: multiple of 8 (sublane) or the full batch dimension.
    if B % 8 == 0:
        TB = min(batch_tile, B)
    else:
        TB = B
    grid = (pl.cdiv(B, TB),)

    out_D = D if return_last else nD
    out_shape = jax.ShapeDtypeStruct((B, out_D), jnp.float32)

    # Rough VMEM budget: resident weights + biases + live activation tile +
    # double-buffered I/O tiles + headroom. Clamped to v7x physical (64 MiB).
    w_bytes = w_flat.size * w_flat.dtype.itemsize
    bias_bytes = (b_first.size + b_full.size) * 4
    act_bytes = TB * nD * 4
    io_bytes = 2 * (TB * D * 4 + TB * out_D * 4)
    req = w_bytes + 2 * bias_bytes + 2 * act_bytes + io_bytes + (4 << 20)
    vmem_limit = int(min(max(req, 32 << 20), 64 << 20))

    flops = 2 * B * D * nD + 2 * B * nD * nD * max(num_iterations - 1, 0)
    bytes_accessed = (w_bytes + bias_bytes
                      + B * D * 4            # x0
                      + B * out_D * 4)       # output
    cost = pl.CostEstimate(flops=flops, transcendentals=0,
                           bytes_accessed=bytes_accessed)

    kernel = functools.partial(_fused_iter_seq2d_kernel,
                               block_size=D, num_blocks=n,
                               num_iterations=num_iterations,
                               return_last=return_last)

    out = pl.pallas_call(
        kernel,
        out_shape=out_shape,
        grid=grid,
        in_specs=[
            pl.BlockSpec((TB, D), lambda i: (i, 0)),        # x0 tile
            pl.BlockSpec((nD, nD), lambda i: (0, 0)),       # weights (resident)
            pl.BlockSpec((1, nD), lambda i: (0, 0)),        # b_first (resident)
            pl.BlockSpec((1, nD), lambda i: (0, 0)),        # b_full  (resident)
        ],
        out_specs=pl.BlockSpec((TB, out_D), lambda i: (i, 0)),
        compiler_params=pltpu.CompilerParams(
            dimension_semantics=("parallel",),
            vmem_limit_bytes=vmem_limit),
        cost_estimate=cost,
    )(x0, w_flat, b_first, b_full)

    if return_last:
        return out                                   # (B, D), last block only
    return jnp.transpose(out.reshape(B, n, D), (1, 0, 2))   # (n, B, D)


def _reference(x0, W, b, num_iterations, return_last=True):
    """Pure-JAX f32 reference mirroring the PyTorch module (list-of-blocks form)."""
    n = W.shape[0]
    X = [x0] + [None] * (n - 1)
    for _ in range(num_iterations):
        Y = []
        for i in range(n):
            acc = None
            for j in range(n):
                if X[j] is None:
                    continue
                term = X[j] @ W[i, j] + b[i, j]
                acc = term if acc is None else acc + term
            Y.append(jax.nn.relu(acc))
        X = Y
    return X[-1] if return_last else jnp.stack(X)


if __name__ == "__main__":
    num_blocks = 4     # n x n grid of Linear(D, D) blocks
    batch = 8
    D = 128            # uniform block size
    num_iterations = 3

    key = jax.random.PRNGKey(0)
    kx, kw, kb = jax.random.split(key, 3)
    x0 = jax.random.normal(kx, (batch, D), dtype=jnp.float32)
    # deterministic synthetic parameters for all n*n Linear blocks
    W = 0.05 * jax.random.normal(kw, (num_blocks, num_blocks, D, D), dtype=jnp.float32)
    b = 0.05 * jax.random.normal(kb, (num_blocks, num_blocks, D), dtype=jnp.float32)

    # One-time parameter re-layout (cached across forward calls).
    w_flat, b_first, b_full = prepare_params(W, b, weight_dtype=jnp.bfloat16)
    w_flat, b_first, b_full = jax.block_until_ready((w_flat, b_first, b_full))

    out = iterative_sequential2d(x0, w_flat, b_first, b_full,
                                 num_iterations=num_iterations,
                                 return_last=True)
    out = jax.block_until_ready(out)

    ref = _reference(x0, W, b, num_iterations, return_last=True)
    assert out.shape == (batch, D), out.shape
    # bf16 weights -> slightly loosened tolerance vs the f32 reference.
    assert jnp.allclose(out, ref, rtol=2e-2, atol=2e-2), \
        float(jnp.max(jnp.abs(out - ref)))

    print("KERNEL_OK")
</pallas_src>

<mosaic_0001>
module attributes {stable_mosaic.version = 11 : i64} {
  func.func @_fused_iter_seq2d_kernel(%arg0: i32, %arg1: memref<8x128xf32, #tpu.memory_space<vmem>>, %arg2: memref<512x512xbf16, #tpu.memory_space<vmem>>, %arg3: memref<1x512xf32, #tpu.memory_space<vmem>>, %arg4: memref<1x512xf32, #tpu.memory_space<vmem>>, %arg5: memref<8x128xf32, #tpu.memory_space<vmem>>) attributes {dimension_semantics = [#tpu.dimension_semantics<parallel>], iteration_bounds = array<i64: 1>, scalar_prefetch = 0 : i64, scratch_operands = 0 : i64, tpu.core_type = #tpu.core_type<tc>, window_params = [{transform_indices = @transform_0, window_bounds = array<i64: 8, 128>}, {pipeline_mode = #tpu.pipeline_mode<synchronous>, transform_indices = @transform_1, window_bounds = array<i64: 512, 512>}, {pipeline_mode = #tpu.pipeline_mode<synchronous>, transform_indices = @transform_2, window_bounds = array<i64: 1, 512>}, {pipeline_mode = #tpu.pipeline_mode<synchronous>, transform_indices = @transform_3, window_bounds = array<i64: 1, 512>}, {transform_indices = @transform_4, window_bounds = array<i64: 8, 128>}]} {
    %c0 = arith.constant 0 : index
    %c0_0 = arith.constant 0 : index
    %0 = vector.load %arg3[%c0, %c0_0] : memref<1x512xf32, #tpu.memory_space<vmem>>, vector<1x512xf32>
    %c0_1 = arith.constant 0 : index
    %c0_2 = arith.constant 0 : index
    %1 = vector.load %arg4[%c0_1, %c0_2] : memref<1x512xf32, #tpu.memory_space<vmem>>, vector<1x512xf32>
    %c0_3 = arith.constant 0 : index
    %c0_4 = arith.constant 0 : index
    %2 = vector.load %arg1[%c0_3, %c0_4] : memref<8x128xf32, #tpu.memory_space<vmem>>, vector<8x128xf32>
    %3 = arith.truncf %2 : vector<8x128xf32> to vector<8x128xbf16>
    %c0_5 = arith.constant 0 : index
    %c0_6 = arith.constant 0 : index
    %4 = vector.load %arg2[%c0_5, %c0_6] : memref<512x512xbf16, #tpu.memory_space<vmem>>, vector<128x512xbf16>
    %cst = arith.constant dense<0.000000e+00> : vector<8x512xf32>
    %5 = tpu.matmul %3, %4, %cst {dimension_numbers = #tpu.dot_dimension_numbers<[1], [0], [0], [1], [0, 0, 1, 1], [], []>} : vector<8x128xbf16>, vector<128x512xbf16>, vector<8x512xf32> -> vector<8x512xf32>
    %6 = vector.broadcast %0 : vector<1x512xf32> to vector<8x512xf32>
    %7 = arith.addf %5, %6 : vector<8x512xf32>
    %cst_7 = arith.constant 0.000000e+00 : f32
    %8 = vector.broadcast %cst_7 : f32 to vector<8x512xf32>
    %9 = arith.maximumf %7, %8 : vector<8x512xf32>
    %c0_i32 = arith.constant 0 : i32
    %10 = arith.truncf %9 : vector<8x512xf32> to vector<8x512xbf16>
    %c0_8 = arith.constant 0 : index
    %c0_9 = arith.constant 0 : index
    %11 = vector.load %arg2[%c0_8, %c0_9] : memref<512x512xbf16, #tpu.memory_space<vmem>>, vector<512x512xbf16>
    %cst_10 = arith.constant dense<0.000000e+00> : vector<8x512xf32>
    %12 = tpu.matmul %10, %11, %cst_10 {dimension_numbers = #tpu.dot_dimension_numbers<[1], [0], [0], [1], [0, 0, 1, 1], [], []>} : vector<8x512xbf16>, vector<512x512xbf16>, vector<8x512xf32> -> vector<8x512xf32>
    %13 = vector.broadcast %1 : vector<1x512xf32> to vector<8x512xf32>
    %14 = arith.addf %12, %13 : vector<8x512xf32>
    %cst_11 = arith.constant 0.000000e+00 : f32
    %15 = vector.broadcast %cst_11 : f32 to vector<8x512xf32>
    %16 = arith.maximumf %14, %15 : vector<8x512xf32>
    %c1_i32 = arith.constant 1 : i32
    %17 = arith.truncf %16 : vector<8x512xf32> to vector<8x512xbf16>
    %c0_12 = arith.constant 0 : index
    %c0_13 = arith.constant 0 : index
    %18 = vector.load %arg2[%c0_12, %c0_13] : memref<512x512xbf16, #tpu.memory_space<vmem>>, vector<512x512xbf16>
    %cst_14 = arith.constant dense<0.000000e+00> : vector<8x512xf32>
    %19 = tpu.matmul %17, %18, %cst_14 {dimension_numbers = #tpu.dot_dimension_numbers<[1], [0], [0], [1], [0, 0, 1, 1], [], []>} : vector<8x512xbf16>, vector<512x512xbf16>, vector<8x512xf32> -> vector<8x512xf32>
    %20 = vector.broadcast %1 : vector<1x512xf32> to vector<8x512xf32>
    %21 = arith.addf %19, %20 : vector<8x512xf32>
    %cst_15 = arith.constant 0.000000e+00 : f32
    %22 = vector.broadcast %cst_15 : f32 to vector<8x512xf32>
    %23 = arith.maximumf %21, %22 : vector<8x512xf32>
    %24 = vector.extract_strided_slice %23 {offsets = [0, 384], sizes = [8, 128], strides = [1, 1]} : vector<8x512xf32> to vector<8x128xf32>
    %c0_16 = arith.constant 0 : index
    %c0_17 = arith.constant 0 : index
    %25 = vector.load %arg5[%c0_16, %c0_17] : memref<8x128xf32, #tpu.memory_space<vmem>>, vector<8x128xf32>
    tpu.vector_store %arg5[%c0_16, %c0_17], %24 {strides = array<i32>} : memref<8x128xf32, #tpu.memory_space<vmem>>, vector<8x128xf32>,
    return
  }
  func.func @transform_0(%arg0: i32) -> (i32, i32) {
    %c0_i32 = arith.constant 0 : i32
    %c0_i32_0 = arith.constant 0 : i32
    return %arg0, %c0_i32 : i32, i32
  }
  func.func @transform_1(%arg0: i32) -> (i32, i32) {
    %c0_i32 = arith.constant 0 : i32
    %c0_i32_0 = arith.constant 0 : i32
    %c0_i32_1 = arith.constant 0 : i32
    return %c0_i32, %c0_i32_0 : i32, i32
  }
  func.func @transform_2(%arg0: i32) -> (i32, i32) {
    %c0_i32 = arith.constant 0 : i32
    %c0_i32_0 = arith.constant 0 : i32
    %c0_i32_1 = arith.constant 0 : i32
    return %c0_i32, %c0_i32_0 : i32, i32
  }
  func.func @transform_3(%arg0: i32) -> (i32, i32) {
    %c0_i32 = arith.constant 0 : i32
    %c0_i32_0 = arith.constant 0 : i32
    %c0_i32_1 = arith.constant 0 : i32
    return %c0_i32, %c0_i32_0 : i32, i32
  }
  func.func @transform_4(%arg0: i32) -> (i32, i32) {
    %c0_i32 = arith.constant 0 : i32
    %c0_i32_0 = arith.constant 0 : i32
    return %arg0, %c0_i32 : i32, i32
  }
}

</mosaic_0001>

<bundles_post_ra>
// kernel: iterative_sequential2d.1
= control target key start
LH: loop header
LB: loop body
LE: loop exit
PB: predicated region body
PF: predicated region fallthrough
CT: control target
= control target key end

     0   :  { %9 = vsyncpa [#allocation3], 0  ;;  %s2506_s0 = inlined_call_operand.hbm [shape: f32[8,128], index: 0, kind: input, shape index: {}]   ;;  %s2507_s1 = inlined_call_operand.hbm [shape: bf16[512,512], index: 1, kind: input, shape index: {}]   ;;  %s2508_s2 = inlined_call_operand.hbm [shape: f32[1,512], index: 2, kind: input, shape index: {}]   ;;  %s2509_s3 = inlined_call_operand.hbm [shape: f32[1,512], index: 3, kind: input, shape index: {}]   ;;  %s2510_s4 = inlined_call_operand.hbm [shape: f32[8,128], index: 4, kind: output, shape index: {}]  }
   0x1   :  { %10 = vsyncpa [#allocation6], 0 }
   0x2   :  { %11 = vsyncpa [#allocation9], 0  ;;  %s28_s17 = sshll.u32 %s2507_s1, 4  ;;  %s29_s17 = int_to_ptr.hbm [resolvable:$true] %s28_s17 }
   0x3   :  { %12 = vsyncpa [#allocation4], 0  ;;  %s2341_s18 = smov [#allocation5]   ;;  %s18_s22 = sshll.u32 %s2506_s0, 4  ;;  %s19_s22 = int_to_ptr.hbm [resolvable:$true] %s18_s22 }
   0x4   :  { %s30_s19 = sshll.u32 %s2341_s18, 4  ;;  %s2342_s23 = smov 256   ;;  %s31_s19 = int_to_ptr.vmem [resolvable:$true] %s30_s19 }
   0x5   :  { %s2343_s24 = smov 16   ;;  %s2344_s25 = smov [#allocation2]  }
   0x6   :  { %36 = dma.hbm_to_vmem [thread:$0]  %s29_s17, 16384, %s31_s19, [#allocation6], %s2342_s23, %s2342_s23, %s2343_s24  }
   0x7   :  { %s20_s26 = sshll.u32 %s2344_s25, 4  ;;  %s42_s29 = sshll.u32 %s2508_s2, 4  ;;  %s21_s26 = int_to_ptr.vmem [resolvable:$true] %s20_s26  ;;  %s43_s29 = int_to_ptr.hbm [resolvable:$true] %s42_s29 }
   0x8   :  { %23 = dma.hbm_to_vmem [thread:$0]  %s19_s22, 128, %s21_s26, [#allocation3]  }
   0x9   :  { %s53_s5 = sshll.u32 %s2509_s3, 4  ;;  %s2345_s6 = smov [#allocation7]   ;;  %s54_s5 = int_to_ptr.hbm [resolvable:$true] %s53_s5 }
   0xa   :  { %s44_s7 = sshll.u32 %s2345_s6, 4  ;;  %s2346_s0 = smov [#allocation8]   ;;  %s45_s7 = int_to_ptr.vmem [resolvable:$true] %s44_s7 }
   0xb   :  { %47 = dma.hbm_to_vmem [thread:$0]  %s43_s29, 64, %s45_s7, [#allocation6]  }
   0xc   :  { %s55_s8 = sshll.u32 %s2346_s0, 4  ;;  %s56_s8 = int_to_ptr.vmem [resolvable:$true] %s55_s8 }
   0xd   :  { %58 = dma.hbm_to_vmem [thread:$0]  %s54_s5, 64, %s56_s8, [#allocation9]  }
   0xe   :  { %2333 = dma.done.wait [#allocation3], 128  }
   0xf   :  { %2334 = vsyncadd [#allocation3], 4294967168 }
  0x10   :  { %2335 = dma.done.wait [#allocation6], 16448  }
  0x11   :  { %2336 = vsyncadd [#allocation6], 4294950848 }
  0x12   :  { %2337 = dma.done.wait [#allocation9], 64  }
  0x13   :  { %2338 = vsyncadd [#allocation9], 4294967232  ;;  %v1520_v0 = vld [vmem:[#allocation5 + $0xe0] sm:$0xf]  ;;  %v2076_v1 = vld [vmem:[#allocation5 + $0xec] sm:$0xf0] }
  0x14   :  { %v2074_v2 = vld [vmem:[#allocation5 + $0xe4] sm:$0xf]  ;;  %v1521_v3 = vor.u32 %v2076_v1, %v1520_v0  ;;  %v1522_v4 = vld [vmem:[#allocation5 + $0xf0] sm:$0xf0]  ;;  %v1528_v5 = vld [vmem:[#allocation5 + $0xe8] sm:$0xf] }
  0x15   :  { %v2077_v6 = vld [vmem:[#allocation5 + $0xf4] sm:$0xf0]  ;;  %v1525_v7 = vor.u32 %v2074_v2, %v1522_v4  ;;  %v2075_v9 = vld [vmem:[#allocation5 + $0xec] sm:$0xf]  ;;  %v1530_v10 = vld [vmem:[#allocation5 + $0xf8] sm:$0xf0] }
  0x16   :  { %v1529_v8 = vor.u32 %v2077_v6, %v1528_v5  ;;  %v1504_v11 = vld [vmem:[#allocation5 + $0xc0] sm:$0xf]  ;;  %280 = vmatpush.bf16.msra.mxu0 %v1521_v3  ;;  %v1533_v12 = vor.u32 %v2075_v9, %v1530_v10  ;;  %v2072_v13 = vld [vmem:[#allocation5 + $0xcc] sm:$0xf0]  ;;  %v2070_v14 = vld [vmem:[#allocation5 + $0xc4] sm:$0xf] }
  0x17   :  { %v1506_v15 = vld [vmem:[#allocation5 + $0xd0] sm:$0xf0]  ;;  %293 = vmatpush.bf16.msra.mxu1 %v1525_v7  ;;  %v1505_v16 = vor.u32 %v2072_v13, %v1504_v11  ;;  %v1512_v18 = vld [vmem:[#allocation5 + $0xc8] sm:$0xf]  ;;  %v2073_v19 = vld [vmem:[#allocation5 + $0xd4] sm:$0xf0] }
  0x18   :  { %306 = vmatpush.bf16.msra.mxu2 %v1529_v8  ;;  %v1509_v17 = vor.u32 %v2070_v14, %v1506_v15  ;;  %v2071_v20 = vld [vmem:[#allocation5 + $0xcc] sm:$0xf]  ;;  %319 = vmatpush.bf16.msra.mxu3 %v1533_v12  ;;  %v1513_v21 = vor.u32 %v2073_v19, %v1512_v18  ;;  %v1514_v22 = vld [vmem:[#allocation5 + $0xd8] sm:$0xf0]  ;;  %v1488_v23 = vld [vmem:[#allocation5 + $0xa0] sm:$0xf] }
  0x19   :  { %v2068_v24 = vld [vmem:[#allocation5 + $0xac] sm:$0xf0]  ;;  %v1517_v25 = vor.u32 %v2071_v20, %v1514_v22  ;;  %v2066_v26 = vld [vmem:[#allocation5 + $0xa4] sm:$0xf]  ;;  %v1490_v27 = vld [vmem:[#allocation5 + $0xb0] sm:$0xf0] }
  0x1a   :  { %v1496_v28 = vld [vmem:[#allocation5 + $0xa8] sm:$0xf]  ;;  %281 = vmatpush.bf16.msra.mxu0 %v1505_v16  ;;  %v1489_v29 = vor.u32 %v2068_v24, %v1488_v23  ;;  %v2069_v30 = vld [vmem:[#allocation5 + $0xb4] sm:$0xf0]  ;;  %v2067_v31 = vld [vmem:[#allocation5 + $0xac] sm:$0xf]  ;;  %v1493_v33 = vor.u32 %v2066_v26, %v1490_v27 }
  0x1b   :  { %v1498_v32 = vld [vmem:[#allocation5 + $0xb8] sm:$0xf0]  ;;  %294 = vmatpush.bf16.msra.mxu1 %v1509_v17  ;;  %v1497_v34 = vor.u32 %v2069_v30, %v1496_v28  ;;  %v1472_v35 = vld [vmem:[#allocation5 + $0x80] sm:$0xf]  ;;  %v2064_v36 = vld [vmem:[#allocation5 + $0x8c] sm:$0xf0] }
  0x1c   :  { %307 = vmatpush.bf16.msra.mxu2 %v1513_v21  ;;  %v2062_v37 = vld [vmem:[#allocation5 + $0x84] sm:$0xf]  ;;  %320 = vmatpush.bf16.msra.mxu3 %v1517_v25  ;;  %v1501_v38 = vor.u32 %v2067_v31, %v1498_v32  ;;  %v1474_v39 = vld [vmem:[#allocation5 + $0x90] sm:$0xf0]  ;;  %v1480_v40 = vld [vmem:[#allocation5 + $0x88] sm:$0xf]  ;;  %v1473_v44 = vor.u32 %v2064_v36, %v1472_v35 }
  0x1d   :  { %v2065_v41 = vld [vmem:[#allocation5 + $0x94] sm:$0xf0]  ;;  %v2063_v42 = vld [vmem:[#allocation5 + $0x8c] sm:$0xf]  ;;  %v1482_v43 = vld [vmem:[#allocation5 + $0x98] sm:$0xf0]  ;;  %v1477_v45 = vor.u32 %v2062_v37, %v1474_v39 }
  0x1e   :  { %282 = vmatpush.bf16.msra.mxu0 %v1489_v29  ;;  %v1481_v46 = vor.u32 %v2065_v41, %v1480_v40  ;;  %v1456_v47 = vld [vmem:[#allocation5 + $0x60] sm:$0xf]  ;;  %v2060_v48 = vld [vmem:[#allocation5 + $0x6c] sm:$0xf0]  ;;  %v2058_v49 = vld [vmem:[#allocation5 + $0x64] sm:$0xf]  ;;  %v1485_v50 = vor.u32 %v2063_v42, %v1482_v43 }
  0x1f   :  { %295 = vmatpush.bf16.msra.mxu1 %v1493_v33  ;;  %v1458_v51 = vld [vmem:[#allocation5 + $0x70] sm:$0xf0]  ;;  %v1464_v52 = vld [vmem:[#allocation5 + $0x68] sm:$0xf]  ;;  %v2061_v53 = vld [vmem:[#allocation5 + $0x74] sm:$0xf0]  ;;  %v1457_v56 = vor.u32 %v2060_v48, %v1456_v47 }
  0x20   :  { %308 = vmatpush.bf16.msra.mxu2 %v1497_v34  ;;  %321 = vmatpush.bf16.msra.mxu3 %v1501_v38  ;;  %v2059_v54 = vld [vmem:[#allocation5 + $0x6c] sm:$0xf]  ;;  %v1466_v55 = vld [vmem:[#allocation5 + $0x78] sm:$0xf0]  ;;  %v1461_v57 = vor.u32 %v2058_v49, %v1458_v51  ;;  %v1465_v58 = vor.u32 %v2061_v53, %v1464_v52  ;;  %v1440_v59 = vld [vmem:[#allocation5 + $0x40] sm:$0xf] }
  0x21   :  { %v2056_v60 = vld [vmem:[#allocation5 + $0x4c] sm:$0xf0]  ;;  %v2054_v61 = vld [vmem:[#allocation5 + $0x44] sm:$0xf]  ;;  %v1469_v62 = vor.u32 %v2059_v54, %v1466_v55  ;;  %v1442_v63 = vld [vmem:[#allocation5 + $0x50] sm:$0xf0] }
  0x22   :  { %283 = vmatpush.bf16.msra.mxu0 %v1473_v44  ;;  %v1448_v0 = vld [vmem:[#allocation5 + $0x48] sm:$0xf]  ;;  %v2057_v1 = vld [vmem:[#allocation5 + $0x54] sm:$0xf0]  ;;  %v2055_v2 = vld [vmem:[#allocation5 + $0x4c] sm:$0xf]  ;;  %v1441_v4 = vor.u32 %v2056_v60, %v1440_v59  ;;  %v1445_v5 = vor.u32 %v2054_v61, %v1442_v63 }
  0x23   :  { %296 = vmatpush.bf16.msra.mxu1 %v1477_v45  ;;  %v1450_v3 = vld [vmem:[#allocation5 + $0x58] sm:$0xf0]  ;;  %v1449_v6 = vor.u32 %v2057_v1, %v1448_v0  ;;  %v1424_v7 = vld [vmem:[#allocation5 + $0x20] sm:$0xf]  ;;  %v2052_v8 = vld [vmem:[#allocation5 + $0x2c] sm:$0xf0] }
  0x24   :  { %309 = vmatpush.bf16.msra.mxu2 %v1481_v46  ;;  %322 = vmatpush.bf16.msra.mxu3 %v1485_v50  ;;  %v2050_v9 = vld [vmem:[#allocation5 + $0x24] sm:$0xf]  ;;  %v1453_v10 = vor.u32 %v2055_v2, %v1450_v3  ;;  %v1426_v11 = vld [vmem:[#allocation5 + $0x30] sm:$0xf0]  ;;  %v1432_v12 = vld [vmem:[#allocation5 + $0x28] sm:$0xf]  ;;  %v1425_v16 = vor.u32 %v2052_v8, %v1424_v7 }
  0x25   :  { %v2053_v13 = vld [vmem:[#allocation5 + $0x34] sm:$0xf0]  ;;  %v2051_v14 = vld [vmem:[#allocation5 + $0x2c] sm:$0xf]  ;;  %v1434_v15 = vld [vmem:[#allocation5 + $0x38] sm:$0xf0]  ;;  %v1429_v18 = vor.u32 %v2050_v9, %v1426_v11 }
  0x26   :  { %284 = vmatpush.bf16.msra.mxu0 %v1457_v56  ;;  %v1408_v17 = vld [vmem:[#allocation5] sm:$0xf]  ;;  %v1433_v19 = vor.u32 %v2053_v13, %v1432_v12  ;;  %v2048_v20 = vld [vmem:[#allocation5 + $0xc] sm:$0xf0]  ;;  %v2046_v21 = vld [vmem:[#allocation5 + $0x4] sm:$0xf]  ;;  %v1437_v23 = vor.u32 %v2051_v14, %v1434_v15 }
  0x27   :  { %297 = vmatpush.bf16.msra.mxu1 %v1461_v57  ;;  %v1410_v22 = vld [vmem:[#allocation5 + $0x10] sm:$0xf0]  ;;  %v1416_v24 = vld [vmem:[#allocation5 + $0x8] sm:$0xf]  ;;  %v2049_v25 = vld [vmem:[#allocation5 + $0x14] sm:$0xf0]  ;;  %v1409_v30 = vor.u32 %v2048_v20, %v1408_v17 }
  0x28   :  { %310 = vmatpush.bf16.msra.mxu2 %v1465_v58  ;;  %323 = vmatpush.bf16.msra.mxu3 %v1469_v62  ;;  %v2047_v26 = vld [vmem:[#allocation5 + $0xc] sm:$0xf]  ;;  %v1418_v27 = vld [vmem:[#allocation5 + $0x18] sm:$0xf0]  ;;  %v1648_v28 = vld [vmem:[#allocation5 + $0xe0] sm:$0xf]  ;;  %v1413_v34 = vor.u32 %v2046_v21, %v1410_v22  ;;  %v1417_v35 = vor.u32 %v2049_v25, %v1416_v24 }
  0x29   :  { %v2108_v29 = vld [vmem:[#allocation5 + $0xec] sm:$0xf0]  ;;  %v77_v31 = vld [vmem:[#allocation2] sm:$0xff]  ;;  %v1776_v32 = vld [vmem:[#allocation5 + $0x1e0] sm:$0xf]  ;;  %v1421_v36 = vor.u32 %v2047_v26, %v1418_v27  ;;  %s2347_s2 = smov [#allocation10]  }
  0x2a   :  { %285 = vmatpush.bf16.msra.mxu0 %v1441_v4  ;;  %v2140_v33 = vld [vmem:[#allocation5 + $0x1ec] sm:$0xf0]  ;;  %v1649_v37 = vor.u32 %v2108_v29, %v1648_v28  ;;  %v1632_v38 = vld [vmem:[#allocation5 + $0xc0] sm:$0xf]  ;;  %v78_v41 = vpack.c.bf16 %v77_v31, %v77_v31  ;;  %s1392_s3 = sshll.u32 %s2347_s2, 4  ;;  %s1394_s11 = sshll.u32 %s2510_s4, 4  ;;  %s1393_s3 = int_to_ptr.vmem [resolvable:$true] %s1392_s3  ;;  %s1395_s11 = int_to_ptr.hbm [resolvable:$true] %s1394_s11 }
  0x2b   :  { %298 = vmatpush.bf16.msra.mxu1 %v1445_v5  ;;  %v1904_v39 = vld [vmem:[#allocation5 + $0x2e0] sm:$0xf]  ;;  %v2172_v40 = vld [vmem:[#allocation5 + $0x2ec] sm:$0xf0]  ;;  %v1777_v42 = vor.u32 %v2140_v33, %v1776_v32 }
  0x2c   :  { %311 = vmatpush.bf16.msra.mxu2 %v1449_v6  ;;  %324 = vmatpush.bf16.msra.mxu3 %v1453_v10  ;;  %v2104_v43 = vld [vmem:[#allocation5 + $0xcc] sm:$0xf0]  ;;  %v2032_v44 = vld [vmem:[#allocation5 + $0x3e0] sm:$0xf]  ;;  %v1905_v48 = vor.u32 %v2172_v40, %v1904_v39 }
  0x2d   :  { %v2204_v45 = vld [vmem:[#allocation5 + $0x3ec] sm:$0xf0]  ;;  %v1760_v46 = vld [vmem:[#allocation5 + $0x1c0] sm:$0xf]  ;;  %v1633_v49 = vor.u32 %v2104_v43, %v1632_v38 }
  0x2e   :  { %286 = vmatpush.bf16.msra.mxu0 %v1425_v16  ;;  %v2136_v47 = vld [vmem:[#allocation5 + $0x1cc] sm:$0xf0]  ;;  %v2033_v50 = vor.u32 %v2204_v45, %v2032_v44  ;;  %v1616_v51 = vld [vmem:[#allocation5 + $0xa0] sm:$0xf] }
  0x2f   :  { %299 = vmatpush.bf16.msra.mxu1 %v1429_v18  ;;  %v1888_v52 = vld [vmem:[#allocation5 + $0x2c0] sm:$0xf]  ;;  %v2168_v53 = vld [vmem:[#allocation5 + $0x2cc] sm:$0xf0]  ;;  %v1761_v54 = vor.u32 %v2136_v47, %v1760_v46 }
  0x30   :  { %312 = vmatpush.bf16.msra.mxu2 %v1433_v19  ;;  %325 = vmatpush.bf16.msra.mxu3 %v1437_v23  ;;  %v2100_v55 = vld [vmem:[#allocation5 + $0xac] sm:$0xf0]  ;;  %v2016_v56 = vld [vmem:[#allocation5 + $0x3c0] sm:$0xf]  ;;  %v1889_v60 = vor.u32 %v2168_v53, %v1888_v52 }
  0x31   :  { %v2200_v57 = vld [vmem:[#allocation5 + $0x3cc] sm:$0xf0]  ;;  %v1744_v58 = vld [vmem:[#allocation5 + $0x1a0] sm:$0xf]  ;;  %v1617_v61 = vor.u32 %v2100_v55, %v1616_v51 }
  0x32   :  { %287 = vmatpush.bf16.msra.mxu0 %v1409_v30  ;;  %v2132_v59 = vld [vmem:[#allocation5 + $0x1ac] sm:$0xf0]  ;;  %v2017_v62 = vor.u32 %v2200_v57, %v2016_v56  ;;  %v1600_v63 = vld [vmem:[#allocation5 + $0x80] sm:$0xf]  ;;  %v2106_v56 = vld [vmem:[#allocation5 + $0xe4] sm:$0xf] }
  0x33   :  { %300 = vmatpush.bf16.msra.mxu1 %v1413_v34  ;;  %v1872_v0 = vld [vmem:[#allocation5 + $0x2a0] sm:$0xf]  ;;  %v2164_v1 = vld [vmem:[#allocation5 + $0x2ac] sm:$0xf0]  ;;  %v1745_v2 = vor.u32 %v2132_v59, %v1744_v58  ;;  %v1650_v57 = vld [vmem:[#allocation5 + $0xf0] sm:$0xf0] }
  0x34   :  { %313 = vmatpush.bf16.msra.mxu2 %v1417_v35  ;;  %326 = vmatpush.bf16.msra.mxu3 %v1421_v36  ;;  %v2096_v3 = vld [vmem:[#allocation5 + $0x8c] sm:$0xf0]  ;;  %v2000_v4 = vld [vmem:[#allocation5 + $0x3a0] sm:$0xf]  ;;  %v1873_v8 = vor.u32 %v2164_v1, %v1872_v0  ;;  %v2138_v58 = vld [vmem:[#allocation5 + $0x1e4] sm:$0xf] }
  0x35   :  { %288 = vmatmul.bf16.vlgmr.msra.gmra.mxu0 %v78_v41  ;;  %v2196_v5 = vld [vmem:[#allocation5 + $0x3ac] sm:$0xf0]  ;;  %v1728_v6 = vld [vmem:[#allocation5 + $0x180] sm:$0xf]  ;;  %v1601_v9 = vor.u32 %v2096_v3, %v1600_v63  ;;  %v1778_v59 = vld [vmem:[#allocation5 + $0x1f0] sm:$0xf0] }
  0x36   :  { %1117 = vmatpush.bf16.msrb.mxu0 %v1649_v37  ;;  %301 = vmatmul.bf16.vlgmr.msra.gmra.mxu1 %v78_v41  ;;  %v2128_v7 = vld [vmem:[#allocation5 + $0x18c] sm:$0xf0]  ;;  %v2001_v10 = vor.u32 %v2196_v5, %v2000_v4  ;;  %v1584_v11 = vld [vmem:[#allocation5 + $0x60] sm:$0xf]  ;;  %v2102_v63 = vld [vmem:[#allocation5 + $0xc4] sm:$0xf]  ;;  %v1653_v4 = vor.u32 %v2106_v56, %v1650_v57 }
  0x37   :  { %1130 = vmatpush.bf16.msrb.mxu1 %v1777_v42  ;;  %314 = vmatmul.bf16.vlgmr.msra.gmra.mxu2 %v78_v41  ;;  %v1856_v12 = vld [vmem:[#allocation5 + $0x280] sm:$0xf]  ;;  %v2160_v13 = vld [vmem:[#allocation5 + $0x28c] sm:$0xf0]  ;;  %v1729_v14 = vor.u32 %v2128_v7, %v1728_v6  ;;  %v2170_v6 = vld [vmem:[#allocation5 + $0x2e4] sm:$0xf] }
  0x38   :  { %327 = vmatmul.bf16.vlgmr.msra.gmra.mxu3 %v78_v41  ;;  %1143 = vmatpush.bf16.msrb.mxu2 %v1905_v48  ;;  %v2092_v15 = vld [vmem:[#allocation5 + $0x6c] sm:$0xf0]  ;;  %v1984_v16 = vld [vmem:[#allocation5 + $0x380] sm:$0xf]  ;;  %v1857_v20 = vor.u32 %v2160_v13, %v1856_v12  ;;  %v1906_v7 = vld [vmem:[#allocation5 + $0x2f0] sm:$0xf0] }
  0x39   :  { %1156 = vmatpush.bf16.msrb.mxu3 %v2033_v50  ;;  %v2192_v17 = vld [vmem:[#allocation5 + $0x38c] sm:$0xf0]  ;;  %v1712_v18 = vld [vmem:[#allocation5 + $0x160] sm:$0xf]  ;;  %v1585_v21 = vor.u32 %v2092_v15, %v1584_v11  ;;  %v2034_v11 = vld [vmem:[#allocation5 + $0x3f0] sm:$0xf0] }
  0x3a   :  { %1118 = vmatpush.bf16.msrb.mxu0 %v1633_v49  ;;  %v2124_v19 = vld [vmem:[#allocation5 + $0x16c] sm:$0xf0]  ;;  %v1985_v22 = vor.u32 %v2192_v17, %v1984_v16  ;;  %v1568_v23 = vld [vmem:[#allocation5 + $0x40] sm:$0xf]  ;;  %v2134_v12 = vld [vmem:[#allocation5 + $0x1c4] sm:$0xf]  ;;  %v1909_v16 = vor.u32 %v2170_v6, %v1906_v7 }
  0x3b   :  { %1131 = vmatpush.bf16.msrb.mxu1 %v1761_v54  ;;  %v1840_v24 = vld [vmem:[#allocation5 + $0x260] sm:$0xf]  ;;  %v2156_v25 = vld [vmem:[#allocation5 + $0x26c] sm:$0xf0]  ;;  %v1713_v26 = vor.u32 %v2124_v19, %v1712_v18  ;;  %v1762_v13 = vld [vmem:[#allocation5 + $0x1d0] sm:$0xf0] }
  0x3c   :  { %1144 = vmatpush.bf16.msrb.mxu2 %v1889_v60  ;;  %v2088_v27 = vld [vmem:[#allocation5 + $0x4c] sm:$0xf0]  ;;  %v1968_v28 = vld [vmem:[#allocation5 + $0x360] sm:$0xf]  ;;  %v1841_v32 = vor.u32 %v2156_v25, %v1840_v24  ;;  %v2098_v19 = vld [vmem:[#allocation5 + $0xa4] sm:$0xf] }
  0x3d   :  { %1157 = vmatpush.bf16.msrb.mxu3 %v2017_v62  ;;  %v2188_v29 = vld [vmem:[#allocation5 + $0x36c] sm:$0xf0]  ;;  %v1696_v30 = vld [vmem:[#allocation5 + $0x140] sm:$0xf]  ;;  %v1569_v33 = vor.u32 %v2088_v27, %v1568_v23  ;;  %v1618_v23 = vld [vmem:[#allocation5 + $0xb0] sm:$0xf0] }
  0x3e   :  { %1119 = vmatpush.bf16.msrb.mxu0 %v1617_v61  ;;  %v2120_v31 = vld [vmem:[#allocation5 + $0x14c] sm:$0xf0]  ;;  %v1969_v34 = vor.u32 %v2188_v29, %v1968_v28  ;;  %v1552_v35 = vld [vmem:[#allocation5 + $0x20] sm:$0xf]  ;;  %v2198_v24 = vld [vmem:[#allocation5 + $0x3c4] sm:$0xf]  ;;  %v1621_v29 = vor.u32 %v2098_v19, %v1618_v23 }
  0x3f   :  { %1132 = vmatpush.bf16.msrb.mxu1 %v1745_v2  ;;  %v1824_v36 = vld [vmem:[#allocation5 + $0x240] sm:$0xf]  ;;  %v2152_v37 = vld [vmem:[#allocation5 + $0x24c] sm:$0xf0]  ;;  %v1697_v38 = vor.u32 %v2120_v31, %v1696_v30  ;;  %v2018_v25 = vld [vmem:[#allocation5 + $0x3d0] sm:$0xf0] }
  0x40   :  { %1145 = vmatpush.bf16.msrb.mxu2 %v1873_v8  ;;  %v2084_v39 = vld [vmem:[#allocation5 + $0x2c] sm:$0xf0]  ;;  %v1952_v40 = vld [vmem:[#allocation5 + $0x340] sm:$0xf]  ;;  %v1825_v44 = vor.u32 %v2152_v37, %v1824_v36  ;;  %v1781_v8 = vor.u32 %v2138_v58, %v1778_v59  ;;  %v1746_v27 = vld [vmem:[#allocation5 + $0x1b0] sm:$0xf0]  ;;  %v2021_v30 = vor.u32 %v2198_v24, %v2018_v25 }
  0x41   :  { %1158 = vmatpush.bf16.msrb.mxu3 %v2001_v10  ;;  %v2184_v41 = vld [vmem:[#allocation5 + $0x34c] sm:$0xf0]  ;;  %v1680_v42 = vld [vmem:[#allocation5 + $0x120] sm:$0xf]  ;;  %v1553_v46 = vor.u32 %v2084_v39, %v1552_v35  ;;  %v2202_v10 = vld [vmem:[#allocation5 + $0x3e4] sm:$0xf] }
  0x42   :  { %1120 = vmatpush.bf16.msrb.mxu0 %v1601_v9  ;;  %v2116_v43 = vld [vmem:[#allocation5 + $0x12c] sm:$0xf0]  ;;  %v1536_v45 = vld [vmem:[#allocation5] sm:$0xf]  ;;  %v1953_v47 = vor.u32 %v2184_v41, %v1952_v40  ;;  %v1634_v9 = vld [vmem:[#allocation5 + $0xd0] sm:$0xf0]  ;;  %v2037_v18 = vor.u32 %v2202_v10, %v2034_v11 }
  0x43   :  { %1133 = vmatpush.bf16.msrb.mxu1 %v1729_v14  ;;  %v2080_v48 = vld [vmem:[#allocation5 + $0xc] sm:$0xf0]  ;;  %v1808_v49 = vld [vmem:[#allocation5 + $0x220] sm:$0xf]  ;;  %v1681_v51 = vor.u32 %v2116_v43, %v1680_v42  ;;  %v1637_v17 = vor.u32 %v2102_v63, %v1634_v9  ;;  %v2094_v31 = vld [vmem:[#allocation5 + $0x84] sm:$0xf] }
  0x44   :  { %1146 = vmatpush.bf16.msrb.mxu2 %v1857_v20  ;;  %v2148_v50 = vld [vmem:[#allocation5 + $0x22c] sm:$0xf0]  ;;  %v1664_v52 = vld [vmem:[#allocation5 + $0x100] sm:$0xf]  ;;  %v1537_v61 = vor.u32 %v2080_v48, %v1536_v45  ;;  %v2166_v20 = vld [vmem:[#allocation5 + $0x2c4] sm:$0xf] }
  0x45   :  { %1159 = vmatpush.bf16.msrb.mxu3 %v1985_v22  ;;  %v1936_v53 = vld [vmem:[#allocation5 + $0x320] sm:$0xf]  ;;  %v2180_v54 = vld [vmem:[#allocation5 + $0x32c] sm:$0xf0]  ;;  %v1809_v60 = vor.u32 %v2148_v50, %v1808_v49  ;;  %v1765_v22 = vor.u32 %v2134_v12, %v1762_v13  ;;  %v1602_v35 = vld [vmem:[#allocation5 + $0x90] sm:$0xf0] }
  0x46   :  { %1121 = vmatpush.bf16.msrb.mxu0 %v1585_v21  ;;  %v2112_v55 = vld [vmem:[#allocation5 + $0x10c] sm:$0xf0]  ;;  %v1937_v62 = vor.u32 %v2180_v54, %v1936_v53  ;;  %v1792_v0 = vld [vmem:[#allocation5 + $0x200] sm:$0xf]  ;;  %v1890_v21 = vld [vmem:[#allocation5 + $0x2d0] sm:$0xf0]  ;;  %v1605_v41 = vor.u32 %v2094_v31, %v1602_v35 }
  0x47   :  { %1134 = vmatpush.bf16.msrb.mxu1 %v1713_v26  ;;  %v2144_v1 = vld [vmem:[#allocation5 + $0x20c] sm:$0xf0]  ;;  %v1920_v2 = vld [vmem:[#allocation5 + $0x300] sm:$0xf]  ;;  %v1665_v3 = vor.u32 %v2112_v55, %v1664_v52  ;;  %v2130_v26 = vld [vmem:[#allocation5 + $0x1a4] sm:$0xf]  ;;  %v1893_v28 = vor.u32 %v2166_v20, %v1890_v21 }
  0x48   :  { %1147 = vmatpush.bf16.msrb.mxu2 %v1841_v32  ;;  %v2176_v5 = vld [vmem:[#allocation5 + $0x30c] sm:$0xf0]  ;;  %v1793_v14 = vor.u32 %v2144_v1, %v1792_v0  ;;  %v2162_v32 = vld [vmem:[#allocation5 + $0x2a4] sm:$0xf]  ;;  %v2002_v37 = vld [vmem:[#allocation5 + $0x3b0] sm:$0xf0] }
  0x49   :  { %1160 = vmatpush.bf16.msrb.mxu3 %v1969_v34  ;;  %v1921_v15 = vor.u32 %v2176_v5, %v1920_v2  ;;  %v1749_v34 = vor.u32 %v2130_v26, %v1746_v27  ;;  %v2194_v36 = vld [vmem:[#allocation5 + $0x3a4] sm:$0xf]  ;;  %v1730_v39 = vld [vmem:[#allocation5 + $0x190] sm:$0xf0] }
  0x4a   :  { %1122 = vmatpush.bf16.msrb.mxu0 %v1569_v33  ;;  %v1874_v33 = vld [vmem:[#allocation5 + $0x2b0] sm:$0xf0]  ;;  %v2005_v42 = vor.u32 %v2194_v36, %v2002_v37  ;;  %v2090_v43 = vld [vmem:[#allocation5 + $0x64] sm:$0xf] }
  0x4b   :  { %1135 = vmatpush.bf16.msrb.mxu1 %v1697_v38  ;;  %v2126_v38 = vld [vmem:[#allocation5 + $0x184] sm:$0xf]  ;;  %v1877_v40 = vor.u32 %v2162_v32, %v1874_v33  ;;  %v1858_v45 = vld [vmem:[#allocation5 + $0x290] sm:$0xf0] }
  0x4c   :  { %1148 = vmatpush.bf16.msrb.mxu2 %v1825_v44  ;;  %v2158_v44 = vld [vmem:[#allocation5 + $0x284] sm:$0xf]  ;;  %v1986_v49 = vld [vmem:[#allocation5 + $0x390] sm:$0xf0] }
  0x4d   :  { %1161 = vmatpush.bf16.msrb.mxu3 %v1953_v47  ;;  %v1586_v47 = vld [vmem:[#allocation5 + $0x70] sm:$0xf0]  ;;  %v2190_v48 = vld [vmem:[#allocation5 + $0x384] sm:$0xf]  ;;  %v1861_v52 = vor.u32 %v2158_v44, %v1858_v45  ;;  %v2141_v44 = vld [vmem:[#allocation5 + $0x1f4] sm:$0xf0] }
  0x4e   :  { %1123 = vmatpush.bf16.msrb.mxu0 %v1553_v46  ;;  %v1733_v46 = vor.u32 %v2126_v38, %v1730_v39  ;;  %v2122_v50 = vld [vmem:[#allocation5 + $0x164] sm:$0xf]  ;;  %v1589_v53 = vor.u32 %v2090_v43, %v1586_v47  ;;  %v1989_v54 = vor.u32 %v2190_v48, %v1986_v49  ;;  %v1570_v57 = vld [vmem:[#allocation5 + $0x50] sm:$0xf0]  ;;  %v1784_v43 = vld [vmem:[#allocation5 + $0x1e8] sm:$0xf] }
  0x4f   :  { %1136 = vmatpush.bf16.msrb.mxu1 %v1681_v51  ;;  %v1714_v51 = vld [vmem:[#allocation5 + $0x170] sm:$0xf0]  ;;  %v2086_v56 = vld [vmem:[#allocation5 + $0x44] sm:$0xf] }
  0x50   :  { %1149 = vmatpush.bf16.msrb.mxu2 %v1809_v60  ;;  %v1717_v55 = vor.u32 %v2122_v50, %v1714_v51  ;;  %v2118_v58 = vld [vmem:[#allocation5 + $0x144] sm:$0xf]  ;;  %v1698_v59 = vld [vmem:[#allocation5 + $0x150] sm:$0xf0]  ;;  %v1573_v60 = vor.u32 %v2086_v56, %v1570_v57  ;;  %v1785_v51 = vor.u32 %v2141_v44, %v1784_v43  ;;  %v2137_v56 = vld [vmem:[#allocation5 + $0x1d4] sm:$0xf0] }
  0x51   :  { %1162 = vmatpush.bf16.msrb.mxu3 %v1937_v62  ;;  %v2154_v62 = vld [vmem:[#allocation5 + $0x264] sm:$0xf]  ;;  %v1842_v63 = vld [vmem:[#allocation5 + $0x270] sm:$0xf0] }
  0x52   :  { %1124 = vmatpush.bf16.msrb.mxu0 %v1537_v61  ;;  %v1701_v61 = vor.u32 %v2118_v58, %v1698_v59  ;;  %v2186_v0 = vld [vmem:[#allocation5 + $0x364] sm:$0xf]  ;;  %v1845_v1 = vor.u32 %v2154_v62, %v1842_v63  ;;  %v1970_v2 = vld [vmem:[#allocation5 + $0x370] sm:$0xf0]  ;;  %v1912_v62 = vld [vmem:[#allocation5 + $0x2e8] sm:$0xf] }
  0x53   :  { %1137 = vmatpush.bf16.msrb.mxu1 %v1665_v3  ;;  %v1973_v3 = vor.u32 %v2186_v0, %v1970_v2  ;;  %v1554_v5 = vld [vmem:[#allocation5 + $0x30] sm:$0xf0]  ;;  %v2114_v7 = vld [vmem:[#allocation5 + $0x124] sm:$0xf]  ;;  %v2173_v63 = vld [vmem:[#allocation5 + $0x2f4] sm:$0xf0] }
  0x54   :  { %1150 = vmatpush.bf16.msrb.mxu2 %v1793_v14  ;;  %v2150_v10 = vld [vmem:[#allocation5 + $0x244] sm:$0xf]  ;;  %v1826_v11 = vld [vmem:[#allocation5 + $0x250] sm:$0xf0]  ;;  %v2040_v0 = vld [vmem:[#allocation5 + $0x3e8] sm:$0xf] }
  0x55   :  { %1163 = vmatpush.bf16.msrb.mxu3 %v1921_v15  ;;  %v2182_v12 = vld [vmem:[#allocation5 + $0x344] sm:$0xf]  ;;  %v1829_v13 = vor.u32 %v2150_v10, %v1826_v11  ;;  %v1954_v14 = vld [vmem:[#allocation5 + $0x350] sm:$0xf0]  ;;  %v1913_v11 = vor.u32 %v2173_v63, %v1912_v62  ;;  %v2085_v62 = vld [vmem:[#allocation5 + $0x34] sm:$0xf0] }
  0x56   :  { %1169 = vmatpush.bf16.msra.mxu0 %v1653_v4  ;;  %v2082_v4 = vld [vmem:[#allocation5 + $0x24] sm:$0xf]  ;;  %v1957_v15 = vor.u32 %v2182_v12, %v1954_v14  ;;  %v1666_v20 = vld [vmem:[#allocation5 + $0x110] sm:$0xf0]  ;;  %v1688_v63 = vld [vmem:[#allocation5 + $0x128] sm:$0xf] }
  0x57   :  { %1182 = vmatpush.bf16.msra.mxu1 %v1781_v8  ;;  %v1557_v6 = vor.u32 %v2082_v4, %v1554_v5  ;;  %v1682_v8 = vld [vmem:[#allocation5 + $0x130] sm:$0xf0]  ;;  %v2178_v25 = vld [vmem:[#allocation5 + $0x324] sm:$0xf]  ;;  %v2205_v4 = vld [vmem:[#allocation5 + $0x3f4] sm:$0xf0] }
  0x58   :  { %1195 = vmatpush.bf16.msra.mxu2 %v1909_v16  ;;  %v1685_v9 = vor.u32 %v2114_v7, %v1682_v8  ;;  %v2078_v16 = vld [vmem:[#allocation5 + $0x4] sm:$0xf]  ;;  %v1810_v23 = vld [vmem:[#allocation5 + $0x230] sm:$0xf0]  ;;  %v1624_v5 = vld [vmem:[#allocation5 + $0xa8] sm:$0xf] }
  0x59   :  { %1208 = vmatpush.bf16.msra.mxu3 %v2037_v18  ;;  %v2110_v18 = vld [vmem:[#allocation5 + $0x104] sm:$0xf]  ;;  %v1938_v26 = vld [vmem:[#allocation5 + $0x330] sm:$0xf0]  ;;  %v1752_v8 = vld [vmem:[#allocation5 + $0x1a8] sm:$0xf] }
  0x5a   :  { %1170 = vmatpush.bf16.msra.mxu0 %v1637_v17  ;;  %v1538_v17 = vld [vmem:[#allocation5 + $0x10] sm:$0xf0]  ;;  %v1669_v21 = vor.u32 %v2110_v18, %v1666_v20  ;;  %v1941_v27 = vor.u32 %v2178_v25, %v1938_v26  ;;  %v2174_v31 = vld [vmem:[#allocation5 + $0x304] sm:$0xf]  ;;  %v2201_v20 = vld [vmem:[#allocation5 + $0x3d4] sm:$0xf0] }
  0x5b   :  { %1183 = vmatpush.bf16.msra.mxu1 %v1765_v22  ;;  %v1541_v19 = vor.u32 %v2078_v16, %v1538_v17  ;;  %v2146_v22 = vld [vmem:[#allocation5 + $0x224] sm:$0xf]  ;;  %v1922_v32 = vld [vmem:[#allocation5 + $0x310] sm:$0xf0]  ;;  %v2169_v16 = vld [vmem:[#allocation5 + $0x2d4] sm:$0xf0] }
  0x5c   :  { %1196 = vmatpush.bf16.msra.mxu2 %v1893_v28  ;;  %v1813_v24 = vor.u32 %v2146_v22, %v1810_v23  ;;  %v2142_v28 = vld [vmem:[#allocation5 + $0x204] sm:$0xf]  ;;  %v1925_v33 = vor.u32 %v2174_v31, %v1922_v32  ;;  %v2024_v17 = vld [vmem:[#allocation5 + $0x3c8] sm:$0xf]  ;;  %v2097_v22 = vld [vmem:[#allocation5 + $0x94] sm:$0xf0] }
  0x5d   :  { %1209 = vmatpush.bf16.msra.mxu3 %v2021_v30  ;;  %v1736_v23 = vld [vmem:[#allocation5 + $0x188] sm:$0xf]  ;;  %v2165_v31 = vld [vmem:[#allocation5 + $0x2b4] sm:$0xf0] }
  0x5e   :  { %1171 = vmatpush.bf16.msra.mxu0 %v1621_v29  ;;  %v1794_v29 = vld [vmem:[#allocation5 + $0x210] sm:$0xf0] }
  0x5f   :  { %1184 = vmatpush.bf16.msra.mxu1 %v1749_v34  ;;  %v1797_v30 = vor.u32 %v2142_v28, %v1794_v29  ;;  %v75_v34 = vld [vmem:[#allocation7] sm:$0xf]  ;;  %v2025_v28 = vor.u32 %v2201_v20, %v2024_v17  ;;  %v2139_v17 = vld [vmem:[#allocation5 + $0x1ec] sm:$0xf] }
  0x60   :  { %1197 = vmatpush.bf16.msra.mxu2 %v1877_v40  ;;  %v112_v35 = vperm.slane %v75_v34, 0  ;;  %v113_v36 = vperm.slane %v75_v34, 1  ;;  %v1656_v40 = vld [vmem:[#allocation5 + $0xe8] sm:$0xf]  ;;  %v114_v47 = vperm.slane %v75_v34, 2  ;;  %v115_v50 = vperm.slane %v75_v34, 3 }
  0x61   :  { %1210 = vmatpush.bf16.msra.mxu3 %v2005_v42  ;;  %v2197_v34 = vld [vmem:[#allocation5 + $0x3b4] sm:$0xf0] }
  0x62   :  { %1172 = vmatpush.bf16.msra.mxu0 %v1605_v41  ;;  %v2109_v41 = vld [vmem:[#allocation5 + $0xf4] sm:$0xf0] }
  0x63   :  { %1185 = vmatpush.bf16.msra.mxu1 %v1733_v46  ;;  %v1657_v48 = vor.u32 %v2109_v41, %v1656_v40  ;;  %v1864_v41 = vld [vmem:[#allocation5 + $0x288] sm:$0xf] }
  0x64   :  { %1198 = vmatpush.bf16.msra.mxu2 %v1861_v52  ;;  %v1640_v52 = vld [vmem:[#allocation5 + $0xc8] sm:$0xf] }
  0x65   :  { %1211 = vmatpush.bf16.msra.mxu3 %v1989_v54 }
  0x66   :  { %1173 = vmatpush.bf16.msra.mxu0 %v1589_v53  ;;  %v2105_v53 = vld [vmem:[#allocation5 + $0xd4] sm:$0xf0] }
  0x67   :  { %1186 = vmatpush.bf16.msra.mxu1 %v1717_v55  ;;  %v1768_v55 = vld [vmem:[#allocation5 + $0x1c8] sm:$0xf] }
  0x68   :  { %1199 = vmatpush.bf16.msra.mxu2 %v1845_v1 }
  0x69   :  { %1212 = vmatpush.bf16.msra.mxu3 %v1973_v3  ;;  %v1769_v3 = vor.u32 %v2137_v56, %v1768_v55  ;;  %v1848_v55 = vld [vmem:[#allocation5 + $0x268] sm:$0xf]  ;;  %v2157_v56 = vld [vmem:[#allocation5 + $0x274] sm:$0xf0] }
  0x6a   :  { %1174 = vmatpush.bf16.msra.mxu0 %v1573_v60 }
  0x6b   :  { %1187 = vmatpush.bf16.msra.mxu1 %v1701_v61  ;;  %v1641_v61 = vor.u32 %v2105_v53, %v1640_v52 }
  0x6c   :  { %1200 = vmatpush.bf16.msra.mxu2 %v1829_v13  ;;  %v2041_v13 = vor.u32 %v2205_v4, %v2040_v0  ;;  %v2117_v0 = vld [vmem:[#allocation5 + $0x134] sm:$0xf0] }
  0x6d   :  { %1213 = vmatpush.bf16.msra.mxu3 %v1957_v15  ;;  %v1896_v15 = vld [vmem:[#allocation5 + $0x2c8] sm:$0xf]  ;;  %v2153_v4 = vld [vmem:[#allocation5 + $0x254] sm:$0xf0] }
  0x6e   :  { %1175 = vmatpush.bf16.msra.mxu0 %v1557_v6  ;;  %v2101_v6 = vld [vmem:[#allocation5 + $0xb4] sm:$0xf0]  ;;  %v1897_v26 = vor.u32 %v2169_v16, %v1896_v15  ;;  %v1658_v16 = vld [vmem:[#allocation5 + $0xf8] sm:$0xf0] }
  0x6f   :  { %1188 = vmatpush.bf16.msra.mxu1 %v1685_v9  ;;  %v2133_v9 = vld [vmem:[#allocation5 + $0x1b4] sm:$0xf0]  ;;  %v1625_v14 = vor.u32 %v2101_v6, %v1624_v5  ;;  %v1960_v5 = vld [vmem:[#allocation5 + $0x348] sm:$0xf] }
  0x70   :  { %1201 = vmatpush.bf16.msra.mxu2 %v1813_v24  ;;  %v2129_v24 = vld [vmem:[#allocation5 + $0x194] sm:$0xf0] }
  0x71   :  { %1214 = vmatpush.bf16.msra.mxu3 %v1941_v27  ;;  %v1737_v32 = vor.u32 %v2129_v24, %v1736_v23 }
  0x72   :  { %1176 = vmatpush.bf16.msra.mxu0 %v1541_v19  ;;  %v1753_v19 = vor.u32 %v2133_v9, %v1752_v8  ;;  %v2185_v8 = vld [vmem:[#allocation5 + $0x354] sm:$0xf0]  ;;  %v1544_v9 = vld [vmem:[#allocation5 + $0x8] sm:$0xf] }
  0x73   :  { %1189 = vmatpush.bf16.msra.mxu1 %v1669_v21  ;;  %v1608_v21 = vld [vmem:[#allocation5 + $0x88] sm:$0xf]  ;;  %v1961_v20 = vor.u32 %v2185_v8, %v1960_v5  ;;  %v2010_v8 = vld [vmem:[#allocation5 + $0x3b8] sm:$0xf0] }
  0x74   :  { %1202 = vmatpush.bf16.msra.mxu2 %v1797_v30  ;;  %v1609_v29 = vor.u32 %v2097_v22, %v1608_v21  ;;  %v1880_v30 = vld [vmem:[#allocation5 + $0x2a8] sm:$0xf]  ;;  %v2149_v22 = vld [vmem:[#allocation5 + $0x234] sm:$0xf0] }
  0x75   :  { %1215 = vmatpush.bf16.msra.mxu3 %v1925_v33  ;;  %v2008_v33 = vld [vmem:[#allocation5 + $0x3a8] sm:$0xf] }
  0x76   :  { %v2009_v40 = vor.u32 %v2197_v34, %v2008_v33  ;;  %v1816_v21 = vld [vmem:[#allocation5 + $0x228] sm:$0xf]  ;;  %v1770_v33 = vld [vmem:[#allocation5 + $0x1d8] sm:$0xf0] }
  0xb2   :  { %v289_v37 = vpop.f32.mrf.mxu0 }
  0xb3   :  { %v290_v38 = vadd.f32 %v289_v37, %v112_v35  ;;  %v302_v39 = vpop.f32.mrf.mxu1  ;;  %v1592_v35 = vld [vmem:[#allocation5 + $0x68] sm:$0xf] }
  0xb4   :  { %v303_v42 = vadd.f32 %v302_v39, %v113_v36  ;;  %v2093_v36 = vld [vmem:[#allocation5 + $0x74] sm:$0xf0]  ;;  %v1720_v37 = vld [vmem:[#allocation5 + $0x168] sm:$0xf]  ;;  %v1881_v39 = vor.u32 %v2165_v31, %v1880_v30  ;;  %v1817_v30 = vor.u32 %v2149_v22, %v1816_v21  ;;  %v1642_v31 = vld [vmem:[#allocation5 + $0xd8] sm:$0xf0] }
  0xb5   :  { %v332_v45 = vmax.f32 %v290_v38, 0.0  ;;  %v2125_v38 = vld [vmem:[#allocation5 + $0x174] sm:$0xf0]  ;;  %v1593_v43 = vor.u32 %v2093_v36, %v1592_v35  ;;  %v1800_v35 = vld [vmem:[#allocation5 + $0x208] sm:$0xf] }
  0xb6   :  { %v333_v46 = vmax.f32 %v303_v42, 0.0  ;;  %v2161_v42 = vld [vmem:[#allocation5 + $0x294] sm:$0xf0]  ;;  %v1721_v44 = vor.u32 %v2125_v38, %v1720_v37  ;;  %v1928_v37 = vld [vmem:[#allocation5 + $0x308] sm:$0xf] }
  0xb7   :  { %v2385_v49 = vpack.c.bf16 %v332_v45, %v332_v45  ;;  %v1992_v45 = vld [vmem:[#allocation5 + $0x388] sm:$0xf]  ;;  %v1865_v52 = vor.u32 %v2161_v42, %v1864_v41  ;;  %v2145_v36 = vld [vmem:[#allocation5 + $0x214] sm:$0xf0]  ;;  %v2191_v21 = vld [vmem:[#allocation5 + $0x38c] sm:$0xf] }
  0xb8   :  { %v2387_v54 = vpack.c.bf16 %v333_v46, %v333_v46  ;;  %v2193_v46 = vld [vmem:[#allocation5 + $0x394] sm:$0xf0]  ;;  %v1994_v22 = vld [vmem:[#allocation5 + $0x398] sm:$0xf0] }
  0xb9   :  { %1125 = vmatmul.bf16.vlgmr.msrb.gmra.mxu0 %v2385_v49  ;;  %v1993_v53 = vor.u32 %v2193_v46, %v1992_v45  ;;  %v2177_v38 = vld [vmem:[#allocation5 + $0x314] sm:$0xf0]  ;;  %v2099_v45 = vld [vmem:[#allocation5 + $0xac] sm:$0xf]  ;;  %v1801_v46 = vor.u32 %v2145_v36, %v1800_v35  ;;  %v1978_v36 = vld [vmem:[#allocation5 + $0x378] sm:$0xf0] }
  0xba   :  { %v315_v57 = vpop.f32.mrf.mxu2  ;;  %1138 = vmatmul.bf16.vlgmr.msrb.gmra.mxu1 %v2387_v54  ;;  %1221 = vmatpush.bf16.msrb.mxu0 %v1657_v48  ;;  %v291_v60 = vpop.f32.mrf.mxu0  ;;  %v2089_v48 = vld [vmem:[#allocation5 + $0x54] sm:$0xf0]  ;;  %v2187_v35 = vld [vmem:[#allocation5 + $0x36c] sm:$0xf] }
  0xbb   :  { %v316_v58 = vadd.f32 %v315_v57, %v114_v47  ;;  %v328_v59 = vpop.f32.mrf.mxu3  ;;  %1234 = vmatpush.bf16.msrb.mxu1 %v1785_v51  ;;  %v304_v2 = vpop.f32.mrf.mxu1  ;;  %v1576_v47 = vld [vmem:[#allocation5 + $0x48] sm:$0xf]  ;;  %v2121_v51 = vld [vmem:[#allocation5 + $0x154] sm:$0xf0] }
  0xbc   :  { %v329_v1 = vadd.f32 %v328_v59, %v115_v50  ;;  %v1704_v50 = vld [vmem:[#allocation5 + $0x148] sm:$0xf]  ;;  %v1577_v57 = vor.u32 %v2089_v48, %v1576_v47  ;;  %v2189_v60 = vld [vmem:[#allocation5 + $0x374] sm:$0xf0]  ;;  %v1626_v47 = vld [vmem:[#allocation5 + $0xb8] sm:$0xf0] }
  0xbd   :  { %v334_v7 = vmax.f32 %v316_v58, 0.0  ;;  %v1705_v58 = vor.u32 %v2121_v51, %v1704_v50  ;;  %v1976_v59 = vld [vmem:[#allocation5 + $0x368] sm:$0xf]  ;;  %v2131_v48 = vld [vmem:[#allocation5 + $0x1ac] sm:$0xf]  ;;  %v1929_v51 = vor.u32 %v2177_v38, %v1928_v37 }
  0xbe   :  { %v335_v10 = vmax.f32 %v329_v1, 0.0  ;;  %1222 = vmatpush.bf16.msrb.mxu0 %v1641_v61  ;;  %v1560_v61 = vld [vmem:[#allocation5 + $0x28] sm:$0xf]  ;;  %v1849_v1 = vor.u32 %v2157_v56, %v1848_v55  ;;  %v1977_v2 = vor.u32 %v2189_v60, %v1976_v59  ;;  %v1754_v50 = vld [vmem:[#allocation5 + $0x1b8] sm:$0xf0] }
  0xbf   :  { %v2391_v12 = vpack.c.bf16 %v334_v7, %v334_v7  ;;  %1235 = vmatpush.bf16.msrb.mxu1 %v1769_v3  ;;  %v1832_v3 = vld [vmem:[#allocation5 + $0x248] sm:$0xf]  ;;  %v1561_v6 = vor.u32 %v2085_v62, %v1560_v61  ;;  %v1689_v7 = vor.u32 %v2117_v0, %v1688_v63  ;;  %v2167_v55 = vld [vmem:[#allocation5 + $0x2cc] sm:$0xf]  ;;  %v1898_v56 = vld [vmem:[#allocation5 + $0x2d8] sm:$0xf0] }
  0xc0   :  { %v2393_v18 = vpack.c.bf16 %v335_v10, %v335_v10  ;;  %v2081_v10 = vld [vmem:[#allocation5 + $0x14] sm:$0xf0]  ;;  %v1833_v15 = vor.u32 %v2153_v4, %v1832_v3  ;;  %v2199_v59 = vld [vmem:[#allocation5 + $0x3cc] sm:$0xf]  ;;  %v2026_v60 = vld [vmem:[#allocation5 + $0x3d8] sm:$0xf0] }
  0xc1   :  { %1151 = vmatmul.bf16.vlgmr.msrb.gmra.mxu2 %v2391_v12  ;;  %v1545_v23 = vor.u32 %v2081_v10, %v1544_v9  ;;  %v2095_v61 = vld [vmem:[#allocation5 + $0x8c] sm:$0xf]  ;;  %v1610_v62 = vld [vmem:[#allocation5 + $0x98] sm:$0xf0] }
  0xc2   :  { %1164 = vmatmul.bf16.vlgmr.msrb.gmra.mxu3 %v2393_v18  ;;  %1247 = vmatpush.bf16.msrb.mxu2 %v1913_v11  ;;  %v317_v25 = vpop.f32.mrf.mxu2  ;;  %v1672_v11 = vld [vmem:[#allocation5 + $0x108] sm:$0xf]  ;;  %v2127_v63 = vld [vmem:[#allocation5 + $0x18c] sm:$0xf]  ;;  %v1738_v0 = vld [vmem:[#allocation5 + $0x198] sm:$0xf0]  ;;  %v2431_v5 = vor.u32 %v2095_v61, %v1610_v62 }
  0xc3   :  { %1260 = vmatpush.bf16.msrb.mxu3 %v2041_v13  ;;  %v330_v27 = vpop.f32.mrf.mxu3  ;;  %1223 = vmatpush.bf16.msrb.mxu0 %v1625_v14  ;;  %v2113_v13 = vld [vmem:[#allocation5 + $0x114] sm:$0xf0]  ;;  %v2107_v14 = vld [vmem:[#allocation5 + $0xec] sm:$0xf]  ;;  %v1944_v25 = vld [vmem:[#allocation5 + $0x328] sm:$0xf] }
  0xc4   :  { %1236 = vmatpush.bf16.msrb.mxu1 %v1753_v19  ;;  %v1786_v19 = vld [vmem:[#allocation5 + $0x1f8] sm:$0xf0]  ;;  %v1673_v24 = vor.u32 %v2113_v13, %v1672_v11  ;;  %v2401_v27 = vor.u32 %v2107_v14, %v1658_v16  ;;  %v2163_v3 = vld [vmem:[#allocation5 + $0x2ac] sm:$0xf] }
  0xc5   :  { %v1882_v4 = vld [vmem:[#allocation5 + $0x2b8] sm:$0xf0]  ;;  %v2091_v9 = vld [vmem:[#allocation5 + $0x6c] sm:$0xf] }
  0xc6   :  { %1248 = vmatpush.bf16.msrb.mxu2 %v1897_v26  ;;  %v2181_v26 = vld [vmem:[#allocation5 + $0x334] sm:$0xf0]  ;;  %v1594_v10 = vld [vmem:[#allocation5 + $0x78] sm:$0xf0]  ;;  %v2123_v11 = vld [vmem:[#allocation5 + $0x16c] sm:$0xf]  ;;  %v2438_v14 = vor.u32 %v2163_v3, %v1882_v4 }
  0xc7   :  { %1261 = vmatpush.bf16.msrb.mxu3 %v2025_v28  ;;  %1224 = vmatpush.bf16.msrb.mxu0 %v1609_v29  ;;  %v2403_v28 = vor.u32 %v2139_v17, %v1786_v19  ;;  %v2103_v29 = vld [vmem:[#allocation5 + $0xcc] sm:$0xf]  ;;  %v1945_v34 = vor.u32 %v2181_v26, %v1944_v25  ;;  %v1722_v13 = vld [vmem:[#allocation5 + $0x178] sm:$0xf0]  ;;  %v2445_v19 = vor.u32 %v2091_v9, %v1594_v10 }
  0xc8   :  { %1237 = vmatpush.bf16.msrb.mxu1 %v1737_v32  ;;  %v2135_v32 = vld [vmem:[#allocation5 + $0x1cc] sm:$0xf]  ;;  %v2407_v41 = vor.u32 %v2103_v29, %v1642_v31  ;;  %v1866_v17 = vld [vmem:[#allocation5 + $0x298] sm:$0xf0] }
  0xc9   :  { %1177 = vmatmul.bf16.vlgmr.msra.gmra.mxu0 %v2385_v49  ;;  %v2409_v42 = vor.u32 %v2135_v32, %v1770_v33  ;;  %v2159_v16 = vld [vmem:[#allocation5 + $0x28c] sm:$0xf]  ;;  %v1706_v26 = vld [vmem:[#allocation5 + $0x158] sm:$0xf0] }
  0xca   :  { %1249 = vmatpush.bf16.msrb.mxu2 %v1881_v39  ;;  %1190 = vmatmul.bf16.vlgmr.msra.gmra.mxu1 %v2387_v54  ;;  %v2171_v39 = vld [vmem:[#allocation5 + $0x2ec] sm:$0xf]  ;;  %v2450_v29 = vor.u32 %v2159_v16, %v1866_v17  ;;  %v1850_v32 = vld [vmem:[#allocation5 + $0x278] sm:$0xf0] }
  0xcb   :  { %1262 = vmatpush.bf16.msrb.mxu3 %v2009_v40  ;;  %1225 = vmatpush.bf16.msrb.mxu0 %v1593_v43  ;;  %v1914_v40 = vld [vmem:[#allocation5 + $0x2f8] sm:$0xf0]  ;;  %v2203_v43 = vld [vmem:[#allocation5 + $0x3ec] sm:$0xf] }
  0xcc   :  { %1238 = vmatpush.bf16.msrb.mxu1 %v1721_v44  ;;  %v2042_v44 = vld [vmem:[#allocation5 + $0x3f8] sm:$0xf0]  ;;  %v2119_v25 = vld [vmem:[#allocation5 + $0x14c] sm:$0xf] }
  0xcd   :  { %v2155_v31 = vld [vmem:[#allocation5 + $0x26c] sm:$0xf]  ;;  %v1562_v38 = vld [vmem:[#allocation5 + $0x38] sm:$0xf0] }
  0xce   :  { %1250 = vmatpush.bf16.msrb.mxu2 %v1865_v52  ;;  %v2412_v52 = vor.u32 %v2171_v39, %v1914_v40  ;;  %v2083_v37 = vld [vmem:[#allocation5 + $0x2c] sm:$0xf]  ;;  %v1690_v40 = vld [vmem:[#allocation5 + $0x138] sm:$0xf0] }
  0xcf   :  { %1263 = vmatpush.bf16.msrb.mxu3 %v1993_v53  ;;  %1226 = vmatpush.bf16.msrb.mxu0 %v1577_v57  ;;  %v2415_v53 = vor.u32 %v2203_v43, %v2042_v44  ;;  %v2419_v57 = vor.u32 %v2099_v45, %v1626_v47  ;;  %v2115_v39 = vld [vmem:[#allocation5 + $0x12c] sm:$0xf]  ;;  %v2462_v43 = vor.u32 %v2155_v31, %v1850_v32  ;;  %v1930_v17 = vld [vmem:[#allocation5 + $0x318] sm:$0xf0] }
  0xd0   :  { %1239 = vmatpush.bf16.msrb.mxu1 %v1705_v58  ;;  %v2421_v58 = vor.u32 %v2131_v48, %v1754_v50  ;;  %v2465_v44 = vor.u32 %v2187_v35, %v1978_v36  ;;  %v2151_v45 = vld [vmem:[#allocation5 + $0x24c] sm:$0xf]  ;;  %v1565_v47 = vor.u32 %v2083_v37, %v1562_v38  ;;  %v1693_v48 = vor.u32 %v2115_v39, %v1690_v40 }
  0xd1   :  { %1203 = vmatmul.bf16.vlgmr.msra.gmra.mxu2 %v2391_v12  ;;  %v2183_v50 = vld [vmem:[#allocation5 + $0x34c] sm:$0xf] }
  0xd2   :  { %1216 = vmatmul.bf16.vlgmr.msra.gmra.mxu3 %v2393_v18  ;;  %1251 = vmatpush.bf16.msrb.mxu2 %v1849_v1  ;;  %v2424_v1 = vor.u32 %v2167_v55, %v1898_v56  ;;  %v2079_v55 = vld [vmem:[#allocation5 + $0xc] sm:$0xf]  ;;  %v1546_v56 = vld [vmem:[#allocation5 + $0x18] sm:$0xf0] }
  0xd3   :  { %1264 = vmatpush.bf16.msrb.mxu3 %v1977_v2  ;;  %1227 = vmatpush.bf16.msrb.mxu0 %v1561_v6  ;;  %v2427_v2 = vor.u32 %v2199_v59, %v2026_v60  ;;  %v2433_v6 = vor.u32 %v2127_v63, %v1738_v0  ;;  %v2111_v59 = vld [vmem:[#allocation5 + $0x10c] sm:$0xf]  ;;  %v1674_v60 = vld [vmem:[#allocation5 + $0x118] sm:$0xf0]  ;;  %v1549_v3 = vor.u32 %v2079_v55, %v1546_v56 }
  0xd4   :  { %1240 = vmatpush.bf16.msrb.mxu1 %v1689_v7  ;;  %v2195_v7 = vld [vmem:[#allocation5 + $0x3ac] sm:$0xf]  ;;  %v1818_v0 = vld [vmem:[#allocation5 + $0x238] sm:$0xf0]  ;;  %v1677_v4 = vor.u32 %v2111_v59, %v1674_v60 }
  0xd5   :  { %v2147_v63 = vld [vmem:[#allocation5 + $0x22c] sm:$0xf] }
  0xd6   :  { %1252 = vmatpush.bf16.msrb.mxu2 %v1833_v15  ;;  %v2441_v15 = vor.u32 %v2195_v7, %v2010_v8  ;;  %v2179_v7 = vld [vmem:[#allocation5 + $0x32c] sm:$0xf]  ;;  %v1946_v8 = vld [vmem:[#allocation5 + $0x338] sm:$0xf0]  ;;  %v1821_v9 = vor.u32 %v2147_v63, %v1818_v0 }
  0xd7   :  { %1265 = vmatpush.bf16.msrb.mxu3 %v1961_v20  ;;  %1228 = vmatpush.bf16.msrb.mxu0 %v1545_v23  ;;  %v2447_v20 = vor.u32 %v2123_v11, %v1722_v13  ;;  %v2087_v23 = vld [vmem:[#allocation5 + $0x4c] sm:$0xf]  ;;  %v1949_v10 = vor.u32 %v2179_v7, %v1946_v8  ;;  %v1802_v13 = vld [vmem:[#allocation5 + $0x218] sm:$0xf0] }
  0xd8   :  { %1241 = vmatpush.bf16.msrb.mxu1 %v1673_v24  ;;  %v1578_v24 = vld [vmem:[#allocation5 + $0x58] sm:$0xf0]  ;;  %v2143_v11 = vld [vmem:[#allocation5 + $0x20c] sm:$0xf] }
  0xd9   :  { %v2457_v33 = vor.u32 %v2087_v23, %v1578_v24  ;;  %v2175_v16 = vld [vmem:[#allocation5 + $0x30c] sm:$0xf] }
  0xda   :  { %1253 = vmatpush.bf16.msrb.mxu2 %v1817_v30  ;;  %1229 = vmatmul.bf16.vlgmr.msrb.gmra.mxu0 %v2385_v49  ;;  %v2453_v30 = vor.u32 %v2191_v21, %v1994_v22  ;;  %v1805_v21 = vor.u32 %v2143_v11, %v1802_v13  ;;  %v1933_v22 = vor.u32 %v2175_v16, %v1930_v17 }
  0xdb   :  { %1273 = vmatpush.bf16.msra.mxu0 %v2401_v27  ;;  %1266 = vmatpush.bf16.msrb.mxu3 %v1945_v34  ;;  %v2459_v34 = vor.u32 %v2119_v25, %v1706_v26 }
  0xdc   :  { %1286 = vmatpush.bf16.msra.mxu1 %v2403_v28 }
  0xdd   :  { %1242 = vmatmul.bf16.vlgmr.msrb.gmra.mxu1 %v2387_v54 }
  0xde   :  { %1254 = vmatpush.bf16.msrb.mxu2 %v1801_v46  ;;  %v1834_v46 = vld [vmem:[#allocation5 + $0x258] sm:$0xf0] }
  0xdf   :  { %1274 = vmatpush.bf16.msra.mxu0 %v2407_v41  ;;  %1267 = vmatpush.bf16.msrb.mxu3 %v1929_v51  ;;  %v1962_v51 = vld [vmem:[#allocation5 + $0x358] sm:$0xf0]  ;;  %v1837_v61 = vor.u32 %v2151_v45, %v1834_v46 }
  0xe0   :  { %1287 = vmatpush.bf16.msra.mxu1 %v2409_v42  ;;  %v1965_v62 = vor.u32 %v2183_v50, %v1962_v51 }
  0xe1   :  { %1255 = vmatmul.bf16.vlgmr.msrb.gmra.mxu2 %v2391_v12 }
  0xe2   :  { %1299 = vmatpush.bf16.msra.mxu2 %v2412_v52  ;;  %1268 = vmatmul.bf16.vlgmr.msrb.gmra.mxu3 %v2393_v18 }
  0xe3   :  { %1312 = vmatpush.bf16.msra.mxu3 %v2415_v53  ;;  %1275 = vmatpush.bf16.msra.mxu0 %v2419_v57 }
  0xe4   :  { %1288 = vmatpush.bf16.msra.mxu1 %v2421_v58 }
  0xe6   :  { %1300 = vmatpush.bf16.msra.mxu2 %v2424_v1 }
  0xe7   :  { %1313 = vmatpush.bf16.msra.mxu3 %v2427_v2  ;;  %1276 = vmatpush.bf16.msra.mxu0 %v2431_v5 }
  0xe8   :  { %1289 = vmatpush.bf16.msra.mxu1 %v2433_v6 }
  0xea   :  { %1301 = vmatpush.bf16.msra.mxu2 %v2438_v14 }
  0xeb   :  { %1314 = vmatpush.bf16.msra.mxu3 %v2441_v15  ;;  %1277 = vmatpush.bf16.msra.mxu0 %v2445_v19 }
  0xec   :  { %1290 = vmatpush.bf16.msra.mxu1 %v2447_v20 }
  0xee   :  { %1302 = vmatpush.bf16.msra.mxu2 %v2450_v29 }
  0xef   :  { %1315 = vmatpush.bf16.msra.mxu3 %v2453_v30  ;;  %1278 = vmatpush.bf16.msra.mxu0 %v2457_v33 }
  0xf0   :  { %1291 = vmatpush.bf16.msra.mxu1 %v2459_v34 }
  0xf2   :  { %1303 = vmatpush.bf16.msra.mxu2 %v2462_v43 }
  0xf3   :  { %1316 = vmatpush.bf16.msra.mxu3 %v2465_v44  ;;  %1279 = vmatpush.bf16.msra.mxu0 %v1565_v47 }
  0xf4   :  { %1292 = vmatpush.bf16.msra.mxu1 %v1693_v48 }
  0xf6   :  { %1304 = vmatpush.bf16.msra.mxu2 %v1837_v61 }
  0xf7   :  { %1317 = vmatpush.bf16.msra.mxu3 %v1965_v62  ;;  %1280 = vmatpush.bf16.msra.mxu0 %v1549_v3 }
  0xf8   :  { %1293 = vmatpush.bf16.msra.mxu1 %v1677_v4 }
  0xfa   :  { %1305 = vmatpush.bf16.msra.mxu2 %v1821_v9  ;;  %1281 = vmatmul.bf16.vlgmr.msra.gmra.mxu0 %v2385_v49  ;;  %v2497_v49 = vld [vmem:[#allocation8] sm:$0xf] }
  0xfb   :  { %1333 = vmatpush.bf16.msrb.mxu0 %v2401_v27  ;;  %1318 = vmatpush.bf16.msra.mxu3 %v1949_v10  ;;  %v471_v36 = vperm.slane %v2497_v49, 2 }
  0xfc   :  { %1346 = vmatpush.bf16.msrb.mxu1 %v2403_v28 }
  0xfd   :  { %1294 = vmatmul.bf16.vlgmr.msra.gmra.mxu1 %v2387_v54 }
  0xfe   :  { %1306 = vmatpush.bf16.msra.mxu2 %v1805_v21 }
  0xff   :  { %1334 = vmatpush.bf16.msrb.mxu0 %v2407_v41  ;;  %1319 = vmatpush.bf16.msra.mxu3 %v1933_v22 }
 0x100   :  { %1347 = vmatpush.bf16.msrb.mxu1 %v2409_v42 }
 0x101   :  { %1307 = vmatmul.bf16.vlgmr.msra.gmra.mxu2 %v2391_v12 }
 0x102   :  { %1359 = vmatpush.bf16.msrb.mxu2 %v2412_v52  ;;  %1320 = vmatmul.bf16.vlgmr.msra.gmra.mxu3 %v2393_v18  ;;  %v469_v18 = vperm.slane %v2497_v49, 0 }
 0x103   :  { %1372 = vmatpush.bf16.msrb.mxu3 %v2415_v53  ;;  %1335 = vmatpush.bf16.msrb.mxu0 %v2419_v57 }
 0x104   :  { %1348 = vmatpush.bf16.msrb.mxu1 %v2421_v58 }
 0x106   :  { %1360 = vmatpush.bf16.msrb.mxu2 %v2424_v1 }
 0x107   :  { %1373 = vmatpush.bf16.msrb.mxu3 %v2427_v2  ;;  %1336 = vmatpush.bf16.msrb.mxu0 %v2431_v5 }
 0x108   :  { %1349 = vmatpush.bf16.msrb.mxu1 %v2433_v6 }
 0x10a   :  { %1361 = vmatpush.bf16.msrb.mxu2 %v2438_v14  ;;  %v470_v14 = vperm.slane %v2497_v49, 1 }
 0x10b   :  { %1374 = vmatpush.bf16.msrb.mxu3 %v2441_v15  ;;  %1337 = vmatpush.bf16.msrb.mxu0 %v2445_v19 }
 0x10c   :  { %1350 = vmatpush.bf16.msrb.mxu1 %v2447_v20 }
 0x10e   :  { %1362 = vmatpush.bf16.msrb.mxu2 %v2450_v29 }
 0x10f   :  { %1375 = vmatpush.bf16.msrb.mxu3 %v2453_v30  ;;  %1338 = vmatpush.bf16.msrb.mxu0 %v2457_v33 }
 0x110   :  { %1351 = vmatpush.bf16.msrb.mxu1 %v2459_v34 }
 0x112   :  { %1363 = vmatpush.bf16.msrb.mxu2 %v2462_v43 }
 0x113   :  { %1376 = vmatpush.bf16.msrb.mxu3 %v2465_v44  ;;  %1339 = vmatpush.bf16.msrb.mxu0 %v1565_v47 }
 0x114   :  { %1352 = vmatpush.bf16.msrb.mxu1 %v1693_v48 }
 0x116   :  { %1364 = vmatpush.bf16.msrb.mxu2 %v1837_v61  ;;  %v472_v61 = vperm.slane %v2497_v49, 3 }
 0x117   :  { %1377 = vmatpush.bf16.msrb.mxu3 %v1965_v62  ;;  %1340 = vmatpush.bf16.msrb.mxu0 %v1549_v3 }
 0x118   :  { %1353 = vmatpush.bf16.msrb.mxu1 %v1677_v4 }
 0x11a   :  { %1365 = vmatpush.bf16.msrb.mxu2 %v1821_v9 }
 0x11b   :  { %1378 = vmatpush.bf16.msrb.mxu3 %v1949_v10 }
 0x11e   :  { %1366 = vmatpush.bf16.msrb.mxu2 %v1805_v21 }
 0x11f   :  { %1379 = vmatpush.bf16.msrb.mxu3 %v1933_v22 }
 0x136   :  { %v1126_v54 = vpop.f32.mrf.mxu0 }
 0x137   :  { %v1139_v12 = vpop.f32.mrf.mxu1  ;;  %v1127_v27 = vadd.f32 %v1126_v54, %v469_v18 }
 0x139   :  { %v1140_v42 = vadd.f32 %v1139_v12, %v1127_v27 }
 0x13e   :  { %v1128_v28 = vpop.f32.mrf.mxu0 }
 0x13f   :  { %v1141_v41 = vpop.f32.mrf.mxu1 }
 0x144   :  { %v1152_v52 = vpop.f32.mrf.mxu2 }
 0x145   :  { %v1153_v53 = vadd.f32 %v1152_v52, %v1140_v42  ;;  %v1165_v57 = vpop.f32.mrf.mxu3 }
 0x146   :  { %v1178_v1 = vpop.f32.mrf.mxu0 }
 0x147   :  { %v1166_v58 = vadd.f32 %v1165_v57, %v1153_v53  ;;  %v1191_v2 = vpop.f32.mrf.mxu1  ;;  %v1179_v20 = vadd.f32 %v1178_v1, %v470_v14 }
 0x149   :  { %v1325_v5 = vmax.f32 %v1166_v58, 0.0  ;;  %v1192_v25 = vadd.f32 %v1191_v2, %v1179_v20 }
 0x14b   :  { %v1329_v6 = vpack.c.bf16 %v1325_v5, %v1325_v5 }
 0x14c   :  { %v1154_v15 = vpop.f32.mrf.mxu2 }
 0x14d   :  { %v1167_v19 = vpop.f32.mrf.mxu3  ;;  %1341 = vmatmul.bf16.vlgmr.msrb.gmra.mxu0 %v1329_v6 }
 0x14e   :  { %v1180_v23 = vpop.f32.mrf.mxu0 }
 0x14f   :  { %v1193_v24 = vpop.f32.mrf.mxu1 }
 0x154   :  { %v1204_v26 = vpop.f32.mrf.mxu2 }
 0x155   :  { %v1205_v29 = vadd.f32 %v1204_v26, %v1192_v25  ;;  %v1217_v30 = vpop.f32.mrf.mxu3 }
 0x157   :  { %v1218_v31 = vadd.f32 %v1217_v30, %v1205_v29  ;;  %v1230_v32 = vpop.f32.mrf.mxu0 }
 0x158   :  { %v1231_v39 = vadd.f32 %v1230_v32, %v471_v36 }
 0x159   :  { %v1326_v33 = vmax.f32 %v1218_v31, 0.0 }
 0x15a   :  { %v1243_v34 = vpop.f32.mrf.mxu1 }
 0x15b   :  { %v1330_v35 = vpack.c.bf16 %v1326_v33, %v1326_v33  ;;  %v1244_v44 = vadd.f32 %v1243_v34, %v1231_v39 }
 0x15c   :  { %v1206_v37 = vpop.f32.mrf.mxu2 }
 0x15d   :  { %v1219_v38 = vpop.f32.mrf.mxu3  ;;  %1354 = vmatmul.bf16.vlgmr.msrb.gmra.mxu1 %v1330_v35 }
 0x15f   :  { %v1232_v40 = vpop.f32.mrf.mxu0 }
 0x162   :  { %v1245_v43 = vpop.f32.mrf.mxu1 }
 0x164   :  { %v1256_v45 = vpop.f32.mrf.mxu2 }
 0x165   :  { %v1269_v46 = vpop.f32.mrf.mxu3  ;;  %v1257_v47 = vadd.f32 %v1256_v45, %v1244_v44 }
 0x167   :  { %v1270_v48 = vadd.f32 %v1269_v46, %v1257_v47 }
 0x169   :  { %v1327_v50 = vmax.f32 %v1270_v48, 0.0 }
 0x16b   :  { %v1331_v51 = vpack.c.bf16 %v1327_v50, %v1327_v50 }
 0x16c   :  { %v1258_v55 = vpop.f32.mrf.mxu2 }
 0x16d   :  { %v1271_v56 = vpop.f32.mrf.mxu3  ;;  %1367 = vmatmul.bf16.vlgmr.msrb.gmra.mxu2 %v1331_v51 }
 0x177   :  { %v1282_v59 = vpop.f32.mrf.mxu0 }
 0x178   :  { %v1283_v62 = vadd.f32 %v1282_v59, %v472_v61 }
 0x17a   :  { %v1295_v60 = vpop.f32.mrf.mxu1 }
 0x17b   :  { %v1296_v3 = vadd.f32 %v1295_v60, %v1283_v62 }
 0x17f   :  { %v1284_v63 = vpop.f32.mrf.mxu0 }
 0x182   :  { %v1297_v0 = vpop.f32.mrf.mxu1 }
 0x184   :  { %v1308_v4 = vpop.f32.mrf.mxu2 }
 0x185   :  { %v1309_v7 = vadd.f32 %v1308_v4, %v1296_v3  ;;  %v1321_v8 = vpop.f32.mrf.mxu3 }
 0x187   :  { %v1322_v9 = vadd.f32 %v1321_v8, %v1309_v7 }
 0x189   :  { %v1328_v10 = vmax.f32 %v1322_v9, 0.0 }
 0x18b   :  { %v1332_v11 = vpack.c.bf16 %v1328_v10, %v1328_v10 }
 0x18c   :  { %v1310_v13 = vpop.f32.mrf.mxu2 }
 0x18d   :  { %v1323_v16 = vpop.f32.mrf.mxu3  ;;  %1380 = vmatmul.bf16.vlgmr.msrb.gmra.mxu3 %v1332_v11 }
 0x1ca   :  { %v1342_v17 = vpop.f32.mrf.mxu0 }
 0x1cb   :  { %v1343_v49 = vadd.f32 %v1342_v17, %v472_v61 }
 0x1d2   :  { %v1344_v21 = vpop.f32.mrf.mxu0 }
 0x1da   :  { %v1355_v22 = vpop.f32.mrf.mxu1 }
 0x1db   :  { %v1356_v27 = vadd.f32 %v1355_v22, %v1343_v49 }
 0x1e2   :  { %v1357_v54 = vpop.f32.mrf.mxu1 }
 0x1f0   :  { %v1368_v12 = vpop.f32.mrf.mxu2 }
 0x1f1   :  { %v1369_v28 = vadd.f32 %v1368_v12, %v1356_v27 }
 0x1f8   :  { %v1370_v18 = vpop.f32.mrf.mxu2 }
 0x210   :  { %v1381_v41 = vpop.f32.mrf.mxu3 }
 0x211   :  { %v1382_v42 = vadd.f32 %v1381_v41, %v1369_v28 }
 0x213   :  { %v1385_v52 = vmax.f32 %v1382_v42, 0.0 }
 0x215   :  { %1386 = vst [vmem:[#allocation10] sm:$0xff] %v1385_v52 }
 0x216   :  { %1397 = dma.vmem_to_hbm [thread:$0]  %s1393_s3, 128, %s1395_s11, [#allocation4]  }
 0x218   :  { %v1383_v53 = vpop.f32.mrf.mxu3 }
 0x219   :  { %2339 = dma.done.wait [#allocation4], 128  }
 0x21a   :  { %2340 = vsyncadd [#allocation4], 4294967168 }
 0x21b   :  { %1402 = vsyncpa [#allocation3], 1 }
 0x21c   :  { %1403 = vsyncpa [#allocation6], 1 }
 0x21d   :  { %1404 = vsyncpa [#allocation9], 1 }
 0x21e   :  { %1405 = vsyncpa [#allocation4], 1 }

</bundles_post_ra>
